<compile_context>
chip_gen: v6e
topology: v6e:2x2x1
jax: 0.10.0
libtpu: 0.0.40
codegen_flags: <defaults>
</compile_context>

<pallas_src>
import functools

import jax
import jax.numpy as jnp
import numpy as np
from jax import lax
from jax.experimental import pallas as pl
from jax.experimental.pallas import tpu as pltpu

_LANE = 128
_SUBLANE = 8


def _round_up(x, m):
    return (x + m - 1) // m * m


def _conv_kernel(x_ref, w_ref, b_ref, o_ref):
    # x_ref : (TB, CL)      one batch-row block, channels concatenated on lanes
    # w_ref : (NC_pad, CL)  pre-shifted weight rows (n = o*P + p), K on lane axis
    # b_ref : (1, NC_pad)   bias repeated per output position
    # o_ref : (TB, NC_pad)  output rows in PyTorch .view(B, -1) column order
    acc = lax.dot_general(
        x_ref[...], w_ref[...],
        dimension_numbers=(((1,), (1,)), ((), ())),   # contract lane-vs-lane (NT)
        preferred_element_type=jnp.float32)
    o_ref[...] = (acc + b_ref[...]).astype(o_ref.dtype)


@functools.partial(jax.jit, static_argnames=("padding", "row_block"))
def conv1d_forward(x, weight, bias, padding=1, row_block=256):
    """x: (B, C, L) f32; weight: (O, C, K); bias: (O,). Returns (B, O*P)."""
    B, C, L = x.shape
    O, _, K = weight.shape
    P = L + 2 * padding - K + 1                 # output length (3 for this module)
    assert P >= 1

    L_al = _round_up(L + 2 * padding, _LANE)    # per-channel lane-aligned length
    CL = C * L_al                               # full contraction dim
    NC = O * P                                  # real output columns (o*P + p order)
    NC_pad = _round_up(NC, _SUBLANE)            # pad rows only to 8 sublanes

    TB = min(row_block, _round_up(B, _SUBLANE))
    TB = max(_SUBLANE, _round_up(TB, _SUBLANE))
    B_pad = _round_up(B, TB)
    num_rb = B_pad // TB                        # "parallel" row blocks (v7x 2-TC)

    # ---- host-side prep (single fused pad for x; small static weight reshuffle) --
    # x -> (B_pad, C*L_al): `padding` zeros on the left, alignment zeros on the
    # right, batch rows padded to TB; reshape of the row-major array is free.
    x_big = jnp.pad(
        x, ((0, B_pad - B), (0, 0), (padding, L_al - L - padding))
    ).reshape(B_pad, CL)

    # Weight -> (NC_pad, C*L_al): row n = o*P + p holds w[o, c, :] shifted right by
    # p lanes within each channel segment.  Only depends on the weights (cacheable).
    shifted = [jnp.pad(weight, ((0, 0), (0, 0), (p, L_al - K - p)))
               for p in range(P)]                                   # P x (O, C, L_al)
    w_big = jnp.stack(shifted, axis=1).reshape(NC, CL)              # (O,P,C,L_al)->(NC,CL)
    w_big = jnp.pad(w_big, ((0, NC_pad - NC), (0, 0)))
    b_big = jnp.pad(jnp.repeat(bias, P).reshape(1, NC), ((0, 0), (0, NC_pad - NC)))

    out = pl.pallas_call(
        _conv_kernel,
        out_shape=jax.ShapeDtypeStruct((B_pad, NC_pad), jnp.float32),
        grid_spec=pltpu.PrefetchScalarGridSpec(
            num_scalar_prefetch=0,
            grid=(num_rb,),                       # batch-row blocks only; no K tiling
            in_specs=[
                pl.BlockSpec((TB, CL), lambda i: (i, 0)),
                pl.BlockSpec((NC_pad, CL), lambda i: (0, 0)),   # weight stays resident
                pl.BlockSpec((1, NC_pad), lambda i: (0, 0)),
            ],
            out_specs=pl.BlockSpec((TB, NC_pad), lambda i: (i, 0)),
        ),
        compiler_params=pltpu.CompilerParams(
            dimension_semantics=("parallel",),    # shard row blocks across v7x TCs
        ),
    )(x_big, w_big, b_big)

    # Rows/cols beyond (B, O*P) are alignment padding; column order already matches
    # PyTorch's (B, O, P).view(B, -1).
    return out[:B, :NC]


if __name__ == "__main__":
    # Scaled-down config consistent with CNN(in_channels=3, input_size=3000,
    # output_size=5): kernel_size == input_size, stride=1, padding=1 -> P = 3.
    B, C, L = 16, 3, 192
    O, K, PAD = 5, L, 1

    key = jax.random.PRNGKey(0)
    kx, kw, kbias = jax.random.split(key, 3)
    x = jax.random.normal(kx, (B, C, L), dtype=jnp.float32)
    fan_in = C * K
    bound = 1.0 / np.sqrt(fan_in)
    weight = jax.random.uniform(kw, (O, C, K), minval=-bound, maxval=bound,
                                dtype=jnp.float32)
    bias = jax.random.uniform(kbias, (O,), minval=-bound, maxval=bound,
                              dtype=jnp.float32)

    # row_block=8 so the toy batch exercises a multi-block (grid=(2,)) parallel axis.
    y = conv1d_forward(x, weight, bias, padding=PAD, row_block=8)
    jax.block_until_ready(y)

    P = L + 2 * PAD - K + 1
    assert y.shape == (B, O * P)

    # Silent correctness check against the XLA conv reference.
    ref = lax.conv_general_dilated(
        x, weight, window_strides=(1,), padding=[(PAD, PAD)],
        dimension_numbers=("NCH", "OIH", "NCH"))
    ref = (ref + bias[None, :, None]).reshape(B, -1)
    np.testing.assert_allclose(np.asarray(y), np.asarray(ref), atol=1e-4, rtol=1e-4)

    print("KERNEL_OK")
</pallas_src>

<mosaic_0001>
module attributes {stable_mosaic.version = 11 : i64} {
  func.func @_conv_kernel(%arg0: i32, %arg1: memref<8x768xf32, #tpu.memory_space<vmem>>, %arg2: memref<16x768xf32, #tpu.memory_space<vmem>>, %arg3: memref<1x16xf32, #tpu.memory_space<vmem>>, %arg4: memref<8x16xf32, #tpu.memory_space<vmem>>) attributes {dimension_semantics = [#tpu.dimension_semantics<parallel>], iteration_bounds = array<i64: 2>, scalar_prefetch = 0 : i64, scratch_operands = 0 : i64, tpu.core_type = #tpu.core_type<tc>, window_params = [{transform_indices = @transform_0, window_bounds = array<i64: 8, 768>}, {pipeline_mode = #tpu.pipeline_mode<synchronous>, transform_indices = @transform_1, window_bounds = array<i64: 16, 768>}, {pipeline_mode = #tpu.pipeline_mode<synchronous>, transform_indices = @transform_2, window_bounds = array<i64: 1, 16>}, {transform_indices = @transform_3, window_bounds = array<i64: 8, 16>}]} {
    %c0 = arith.constant 0 : index
    %c0_0 = arith.constant 0 : index
    %0 = vector.load %arg1[%c0, %c0_0] : memref<8x768xf32, #tpu.memory_space<vmem>>, vector<8x768xf32>
    %c0_1 = arith.constant 0 : index
    %c0_2 = arith.constant 0 : index
    %1 = vector.load %arg2[%c0_1, %c0_2] : memref<16x768xf32, #tpu.memory_space<vmem>>, vector<16x768xf32>
    %cst = arith.constant dense<0.000000e+00> : vector<8x16xf32>
    %2 = tpu.matmul %0, %1, %cst {dimension_numbers = #tpu.dot_dimension_numbers<[1], [1], [0], [0], [0, 0, 1, 0], [], []>} : vector<8x768xf32>, vector<16x768xf32>, vector<8x16xf32> -> vector<8x16xf32>
    %c0_3 = arith.constant 0 : index
    %c0_4 = arith.constant 0 : index
    %3 = vector.load %arg3[%c0_3, %c0_4] : memref<1x16xf32, #tpu.memory_space<vmem>>, vector<1x16xf32>
    %4 = vector.broadcast %3 : vector<1x16xf32> to vector<8x16xf32>
    %5 = arith.addf %2, %4 : vector<8x16xf32>
    %c0_5 = arith.constant 0 : index
    %c0_6 = arith.constant 0 : index
    %6 = vector.load %arg4[%c0_5, %c0_6] : memref<8x16xf32, #tpu.memory_space<vmem>>, vector<8x16xf32>
    tpu.vector_store %arg4[%c0_5, %c0_6], %5 {strides = array<i32>} : memref<8x16xf32, #tpu.memory_space<vmem>>, vector<8x16xf32>,
    return
  }
  func.func @transform_0(%arg0: i32) -> (i32, i32) {
    %c0_i32 = arith.constant 0 : i32
    %c0_i32_0 = arith.constant 0 : i32
    return %arg0, %c0_i32 : i32, i32
  }
  func.func @transform_1(%arg0: i32) -> (i32, i32) {
    %c0_i32 = arith.constant 0 : i32
    %c0_i32_0 = arith.constant 0 : i32
    %c0_i32_1 = arith.constant 0 : i32
    return %c0_i32, %c0_i32_0 : i32, i32
  }
  func.func @transform_2(%arg0: i32) -> (i32, i32) {
    %c0_i32 = arith.constant 0 : i32
    %c0_i32_0 = arith.constant 0 : i32
    %c0_i32_1 = arith.constant 0 : i32
    return %c0_i32, %c0_i32_0 : i32, i32
  }
  func.func @transform_3(%arg0: i32) -> (i32, i32) {
    %c0_i32 = arith.constant 0 : i32
    %c0_i32_0 = arith.constant 0 : i32
    return %arg0, %c0_i32 : i32, i32
  }
}

</mosaic_0001>

<bundles_post_ra>
// kernel: conv1d_forward.1
= control target key start
LH: loop header
LB: loop body
LE: loop exit
PB: predicated region body
PF: predicated region fallthrough
CT: control target
= control target key end

     0   :  { %8 = vsyncpa [#allocation3], 0  ;;  %s745_s0 = inlined_call_operand.vmem [shape: f32[16,768], index: 0, kind: input, shape index: {}]   ;;  %s746_s1 = inlined_call_operand.vmem [shape: f32[16,768], index: 1, kind: input, shape index: {}]   ;;  %s747_s2 = inlined_call_operand.vmem [shape: f32[1,16], index: 2, kind: input, shape index: {}]   ;;  %s748_s3 = inlined_call_operand.hbm [shape: f32[16,16], index: 3, kind: output, shape index: {}]  }
   0x1   :  { %10 = vsyncpa [#allocation3 + $0x1], 0  ;;  %s613_s12 = smov 0   ;;  %s615_s13 = smov 0  }
   0x2   :  { %s617_s14 = smov 0   ;;  %s619_s15 = smov 0  }
   0x3 LB: > { %s634_s16 = sadd.s32 4294967295, %s590_s15   ;;  %s479_s17 = sadd.s32 4294967294, %s590_s15   ;;  %s590_s15 = sphi %s619_s15, %s754_s15   ;;  %s586_s14 = sphi %s617_s14, %s753_s14   ;;  %s582_s13 = sphi %s615_s13, %s752_s13   ;;  %s578_s12 = sphi %s613_s12, %s751_s12  }
   0x4   : > { %s638_s18 = sadd.s32 1, %s590_s15   ;;  %s91_s19 = sadd.s32 1, %s586_s14 }
   0x5   : > { %s88_s20 = ssub.s32 %s590_s15, %s638_s18  ;;  %p101_p0 = scmp.ne.s32.totalorder %s586_s14, %s582_s13 }
   0x6   : > { %p89_p1 = scmp.eq.s32.totalorder %s88_s20, 0  ;;  %p102_p2 = scmp.eq.s32.totalorder %s634_s16, 1 }
   0x7   : > { %p107_p3 = scmp.ne.s32.totalorder %s582_s13, %s578_s12  ;;  %p108_p4 = scmp.eq.s32.totalorder %s479_s17, 1 }
   0x8   : > { %s649_s21 = scalar_select %p89_p1, %s586_s14, %s91_s19  }
   0x9   : > { %p651_p5 = por %p102_p2, %p101_p0  ;;  %p655_p6 = por %p108_p4, %p107_p3 }
   0xa   : > { %p482_p7 = scmp.ge.s32.totalorder %s590_s15, 1  ;;  %p140_p8 = scmp.lt.s32.totalorder %s590_s15, 3 }
   0xc   : > { %p141_p9 = pnand %p482_p7, %p140_p8 }
   0xd   : > { %p164_p10 = scmp.lt.s32.totalorder (!%p141_p9), %s634_s16, 1  ;;  %s161_s8 = sand.u32 (!%p141_p9), 1, %s582_s13  }
   0xe   : > { %144 = sbr.rel (%p141_p9) target bundleno = 244 (0xf4), region = 32  ;;  %s483_s11 = sshll.u32 (!%p141_p9), %s161_s8, 3 }
   0xf   : > { %s487_s17 = sshll.u32 (!%p141_p9), %s634_s16, 7  ;;  %s163_s19 = scalar_lea.vmem (!%p141_p9), [#allocation2], %s483_s11 }
  0x10   : > { %s710_s26 = scalar_lea.hbm (!%p141_p9), %s748_s3, %s487_s17  ;;  %s407_s27 = scalar_lea.sflag (!%p141_p9), [#allocation3], %s161_s8 }
  0x13   : > { %v182_v0 = vld [vmem:[%s746_s1 + $0x38] sm:$0xff]  ;;  %v181_v1 = vld [vmem:[%s746_s1 + $0x30] sm:$0xff]  ;;  %v184_v2 = vld [vmem:[%s746_s1 + $0x48] sm:$0xff]  ;;  %s165_s7 = scalar_select %p164_p10, %s634_s16, 1  ;;  %vm404_vm0 = vcmask 130048  }
  0x14   : > { %222 = vmatprep.subr.mxu0 %v182_v0  ;;  %292 = vmatprep.subr.mxu1 %v184_v2  ;;  %v176_v3 = vld [vmem:[%s746_s1 + $0x8] sm:$0xff]  ;;  %v183_v4 = vld [vmem:[%s746_s1 + $0x40] sm:$0xff]  ;;  %v178_v5 = vld [vmem:[%s746_s1 + $0x18] sm:$0xff]  ;;  %s592_s16 = smov [#allocation2]  }
  0x15   : > { %223 = vmatpush1.xpose.msra.mxu0 %v181_v1  ;;  %293 = vmatpush1.xpose.msra.mxu1 %v183_v4  ;;  %v175_v6 = vld [vmem:[%s746_s1] sm:$0xff]  ;;  %v177_v7 = vld [vmem:[%s746_s1 + $0x10] sm:$0xff]  ;;  %s490_s20 = smul.u32 48, %s165_s7  ;;  %v186_v8 = vld [vmem:[%s746_s1 + $0x58] sm:$0xff]  ;;  %s534_s29 = sshll.u32 %s592_s16, 4  ;;  %s535_s29 = int_to_ptr.vmem [resolvable:$false] %s534_s29 }
  0x16   : > { %224 = vmatprep.subr.mxu0 %v176_v3  ;;  %294 = vmatprep.subr.mxu1 %v178_v5  ;;  %v185_v9 = vld [vmem:[%s746_s1 + $0x50] sm:$0xff]  ;;  %v180_v14 = vld [vmem:[%s746_s1 + $0x28] sm:$0xff]  ;;  %v179_v16 = vld [vmem:[%s746_s1 + $0x20] sm:$0xff]  ;;  %s536_s30 = scalar_lea.vmem %s535_s29, 256 }
  0x17   : > { %s168_s28 = scalar_lea.vmem %s745_s0, %s490_s20  ;;  %v485_v18 = vld [vmem:[%s747_s2] ss:$0 sm:$0xff]  ;;  %s420_s20 = sshll.u32 %s163_s19, 4  ;;  %s421_s20 = int_to_ptr.vmem [resolvable:$true] %s420_s20 }
  0x18   : > { %v170_v10 = vld [vmem:[%s168_s28 + $0x8] sm:$0xff]  ;;  %v169_v11 = vld [vmem:[%s168_s28] sm:$0xff]  ;;  %v172_v12 = vld [vmem:[%s168_s28 + $0x18] sm:$0xff]  ;;  %p537_p0 = scmp.lt.s32.totalorder %s421_s20, %s535_s29 }
  0x19   : > { %225 = vmatpush1.xpose.msra.mxu0 %v175_v6  ;;  %295 = vmatpush1.xpose.msra.mxu1 %v177_v7  ;;  %v171_v13 = vld [vmem:[%s168_s28 + $0x10] sm:$0xff]  ;;  %v174_v15 = vld [vmem:[%s168_s28 + $0x28] sm:$0xff]  ;;  %v173_v17 = vld [vmem:[%s168_s28 + $0x20] sm:$0xff]  ;;  %s530_s28 = scalar_lea.vmem %s421_s20, 128 }
  0x1a   : > { %362 = vmatprep.subr.mxu0 %v186_v8  ;;  %258 = vmatprep.mubr.f32.mxu0 %v170_v10  ;;  %p531_p11 = scmp.ne.s32.totalorder %s421_s20, %s530_s28  ;;  %p538_p1 = scmp.lt.s32.totalorder %s536_s30, %s530_s28 }
  0x1b   : > { %328 = vmatprep.mubr.f32.mxu1 %v172_v12 }
  0x1c   : > { %259 = vmatmul.mubr.f32.vlgmr.msra.gmra.mxu0 %v169_v11  ;;  %329 = vmatmul.mubr.f32.vlgmr.msra.gmra.mxu1 %v171_v13  ;;  %p532_p12 = pnand %p531_p11, %p651_p5  ;;  %p539_p2 = por %p538_p1, %p537_p0 }
  0x1d   : > { %363 = vmatpush1.xpose.msra.mxu0 %v185_v9  ;;  %398 = vmatprep.mubr.f32.mxu0 %v174_v15 }
  0x1e   : > { %364 = vmatprep.subr.mxu0 %v180_v14  ;;  %p533_p13 = pneg %p532_p12 }
  0x20   : > { %p540_p3 = pnand %p539_p2, %p533_p13 }
  0x21   : > { %365 = vmatpush1.xpose.msra.mxu0 %v179_v16 }
  0x24   : > { %399 = vmatmul.mubr.f32.vlgmr.msra.gmra.mxu0 %v173_v17 }
  0xdc   : > { %v260_v19 = vpop.f32.mrf.mxu0  ;;  %v330_v20 = vpop.f32.mrf.mxu1 }
  0xdd   : > { %v261_v23 = vadd.f32 %v485_v18, %v260_v19 }
  0xde   : > { %v262_v21 = vpop.f32.mrf.mxu0  ;;  %v332_v22 = vpop.f32.mrf.mxu1 }
  0xdf   : > { %v331_v24 = vadd.f32 %v330_v20, %v261_v23 }
  0xe4   : > { %v400_v25 = vpop.f32.mrf.mxu0 }
  0xe5   : > { %v401_v26 = vadd.f32 %v400_v25, %v331_v24 }
  0xe6   : > { %v402_v27 = vpop.f32.mrf.mxu0 }
  0xe7   : > { %405 = vst.msk [vmem:[%s163_s19] sm:$0xff] %vm404_vm0, %v401_v26 }
  0xe8   : > { %543 = shalt.err (!%p540_p3)
}
  0xe9   : > { %s544_s4 = scalar_lea.hbm %s710_s26, 128  ;;  %s548_s7 = scalar_lea.hbm %s748_s3, 256 }
  0xea   : > { %p545_p4 = scmp.ne.s32.totalorder %s710_s26, %s544_s4  ;;  %p549_p9 = scmp.lt.s32.totalorder %s710_s26, %s748_s3 }
  0xeb   : > { %p550_p10 = scmp.lt.s32.totalorder %s548_s7, %s544_s4 }
  0xec   : > { %p546_p7 = pnand %p545_p4, %p651_p5 }
  0xed   : > { %p551_p11 = por %p550_p10, %p549_p9 }
  0xee   : > { %p547_p8 = pneg %p546_p7 }
  0xf0   : > { %p552_p12 = pnand %p551_p11, %p547_p8 }
  0xf2   : > { %555 = shalt.err (!%p552_p12)
}
  0xf3   : > { %491 = dma.vmem_to_hbm [thread:$0]  (%p651_p5), %s421_s20, 128, %s710_s26, %s407_s27  }
  0xf4 PF: > { %p497_p13 = scmp.ge.s32.totalorder %s590_s15, 2  ;;  %s432_s10 = sand.u32 1, %s578_s12  }
  0xf5   : > { %s433_s11 = scalar_lea.sflag [#allocation3], %s432_s10 }
  0xf6   : > { %p494_p0 = pnand %p497_p13, %p655_p6 }
  0xf8   : > { %p495_p1 = pneg %p494_p0 }
  0xfa   : > { %573 = dma.done.wait (%p495_p1), %s433_s11, 128  }
  0xfb   : > { %575 = vsyncadd (%p495_p1), %s433_s11, 4294967168  ;;  %p13_p2 = scmp.ge.s32.totalorder %s638_s18, 4   ;;  %s751_s12 = smov %s582_s13 }
  0xfc   : > { %s752_s13 = smov %s586_s14  ;;  %s753_s14 = smov %s649_s21 }
  0xfd   : > { %s754_s15 = smov %s638_s18  ;;  %15 = sbr.rel (!%p13_p2) target bundleno = 3 (0x3), region = 67 }
 0x102   :  { %438 = vsyncpa [#allocation3], 1 }
 0x103   :  { %440 = vsyncpa [#allocation3 + $0x1], 1 }

</bundles_post_ra>
